<compile_context>
chip_gen: v6e
topology: v6e:2x2x1
jax: 0.10.0
libtpu: 0.0.40
codegen_flags: <defaults>
</compile_context>

<pallas_src>
import functools

import jax
import jax.numpy as jnp
import numpy as np
from jax.experimental import pallas as pl
from jax.experimental.pallas import tpu as pltpu


def _shuffle_d_kernel(pcol_ref, x_ref, o_ref, *, scale, precision):
    # pcol_ref: (w, w)   resident column de-interleave permutation.
    # x_ref:    (cblk, hout, scale*w) -- lane slice [si*w:(si+1)*w] of row ho
    #           holds original row ho*scale + si.
    # o_ref:    (cblk, scale*scale, hout, wout)
    cblk, hout, sw = x_ref.shape
    w = sw // scale
    wout = w // scale

    pcol = pcol_ref[...]                                   # (w, w)

    if hout % 8 == 0:
        # Fused path: merge (cblk, hout) into M (tile-aligned -> free reshape)
        # so each grid step issues only `scale` large MXU matmuls.
        x2 = x_ref[...].reshape(cblk * hout, sw)
        for si in range(scale):
            rows = x2[:, si * w:(si + 1) * w]              # (cblk*hout, w)
            per = jnp.dot(rows, pcol, precision=precision,
                          preferred_element_type=jnp.float32)
            per = per.astype(o_ref.dtype).reshape(cblk, hout, w)
            for sj in range(scale):
                o_ref[:, si * scale + sj, :, :] = (
                    per[:, :, sj * wout:(sj + 1) * wout])
    else:
        # Fallback: per-channel matmuls (avoids a non-tile-aligned reshape).
        for c in range(cblk):
            plane = x_ref[c]                               # (hout, scale*w)
            for si in range(scale):
                rows = plane[:, si * w:(si + 1) * w]       # (hout, w)
                per = jnp.dot(rows, pcol, precision=precision,
                              preferred_element_type=jnp.float32)
                per = per.astype(o_ref.dtype)
                for sj in range(scale):
                    o_ref[c, si * scale + sj, :, :] = (
                        per[:, sj * wout:(sj + 1) * wout])


def _pick_cblk(BC, plane_bytes, target_bytes=4 << 20, min_steps=2):
    """Largest divisor of BC with block <= target, keeping >= min_steps grid
    steps when possible (v7x has 2 TensorCores)."""
    divisors = [d for d in range(1, BC + 1) if BC % d == 0]
    candidates = [d for d in divisors
                  if d * plane_bytes <= target_bytes
                  and BC // d >= min(min_steps, BC)]
    return max(candidates) if candidates else 1


def shuffle_d(x, scale=2, *, target_block_bytes=4 << 20):
    if scale == 1:
        return x                                            # no-op early out

    b, C, h, w = x.shape
    if h % scale != 0 or w % scale != 0:
        raise ValueError("h and w must be divisible by scale")
    if not jnp.issubdtype(x.dtype, jnp.floating):
        # TODO(synk): integer-exact de-interleave path (no MXU on v7x for int).
        raise NotImplementedError("shuffle_d kernel supports float dtypes only")

    hout, wout = h // scale, w // scale
    s2 = scale * scale
    BC = b * C
    sw = scale * w
    isz = jnp.dtype(x.dtype).itemsize

    cblk = _pick_cblk(BC, hout * sw * isz, target_block_bytes)
    grid = (BC // cblk,)

    # Free (bitcast) reshape: each row of the 3-D view holds all `scale`
    # source rows of one output row, concatenated along lanes.
    xv = x.reshape(BC, hout, sw)

    # Column de-interleave permutation, built once outside the kernel:
    #   pcol[src, sj*wout + wo] = 1  iff  src == wo*scale + sj
    lane = jnp.arange(w, dtype=jnp.int32)
    sj_idx = lane[None, :] // wout
    wo_idx = lane[None, :] - sj_idx * wout
    pcol = (lane[:, None] == wo_idx * scale + sj_idx).astype(x.dtype)

    precision = (jax.lax.Precision.HIGHEST if x.dtype == jnp.float32
                 else jax.lax.Precision.DEFAULT)
    kernel = functools.partial(_shuffle_d_kernel, scale=scale,
                               precision=precision)

    # VMEM budget: double-buffered in/out blocks + resident pcol + temps.
    in_blk = cblk * hout * sw * isz
    pcol_bytes = w * w * isz
    vmem_limit = 2 * (in_blk + in_blk) + 2 * pcol_bytes + 3 * in_blk + (8 << 20)
    vmem_limit = int(min(max(vmem_limit, 32 << 20), 64 << 20))

    flops = 2 * BC * scale * hout * w * w
    bytes_accessed = 2 * BC * h * w * isz + pcol_bytes
    cost = pl.CostEstimate(flops=flops, transcendentals=0,
                           bytes_accessed=bytes_accessed)

    out = pl.pallas_call(
        kernel,
        out_shape=jax.ShapeDtypeStruct((BC, s2, hout, wout), x.dtype),
        grid=grid,
        in_specs=[
            pl.BlockSpec((w, w), lambda i: (0, 0)),          # pcol, resident
            pl.BlockSpec((cblk, hout, sw), lambda i: (i, 0, 0)),
        ],
        out_specs=pl.BlockSpec((cblk, s2, hout, wout),
                               lambda i: (i, 0, 0, 0)),
        compiler_params=pltpu.CompilerParams(
            dimension_semantics=("parallel",),
            vmem_limit_bytes=vmem_limit),
        cost_estimate=cost,
    )(pcol, xv)

    # Free leading-dim reshape back to (b, C*scale**2, hout, wout).
    return out.reshape(b, C * s2, hout, wout)


def _reference(x, scale):
    b, C, h, w = x.shape
    return (x.reshape(b, C, h // scale, scale, w // scale, scale)
              .transpose(0, 1, 3, 5, 2, 4)
              .reshape(b, C * scale * scale, h // scale, w // scale))


if __name__ == "__main__":
    key = jax.random.PRNGKey(0)
    scale = 2

    # Primary test: (2, 4, 16, 16), fused path (hout % 8 == 0).
    b, C, h, w = 2, 4, 16, 16
    x = jax.random.normal(key, (b, C, h, w), dtype=jnp.float32)
    out = jax.block_until_ready(shuffle_d(x, scale=scale))
    ref = _reference(x, scale)
    assert out.shape == ref.shape
    np.testing.assert_allclose(np.asarray(out), np.asarray(ref), rtol=0, atol=0)

    # Secondary test: C=3 (flattened b*C grid) and hout=12 (fallback path).
    b2, C2, h2, w2 = 2, 3, 24, 24
    x2 = jax.random.normal(jax.random.PRNGKey(1), (b2, C2, h2, w2),
                           dtype=jnp.float32)
    out2 = jax.block_until_ready(shuffle_d(x2, scale=scale))
    ref2 = _reference(x2, scale)
    assert out2.shape == ref2.shape
    np.testing.assert_allclose(np.asarray(out2), np.asarray(ref2),
                               rtol=0, atol=0)

    print("KERNEL_OK")
</pallas_src>

<mosaic_0001>
module attributes {stable_mosaic.version = 11 : i64} {
  func.func @_shuffle_d_kernel(%arg0: i32, %arg1: memref<16x16xf32, #tpu.memory_space<vmem>>, %arg2: memref<4x8x32xf32, #tpu.memory_space<vmem>>, %arg3: memref<4x4x8x8xf32, #tpu.memory_space<vmem>>) attributes {dimension_semantics = [#tpu.dimension_semantics<parallel>], iteration_bounds = array<i64: 2>, scalar_prefetch = 0 : i64, scratch_operands = 0 : i64, tpu.core_type = #tpu.core_type<tc>, window_params = [{pipeline_mode = #tpu.pipeline_mode<synchronous>, transform_indices = @transform_0, window_bounds = array<i64: 16, 16>}, {transform_indices = @transform_1, window_bounds = array<i64: 4, 8, 32>}, {transform_indices = @transform_2, window_bounds = array<i64: 4, 4, 8, 8>}]} {
    %c0 = arith.constant 0 : index
    %c0_0 = arith.constant 0 : index
    %0 = vector.load %arg1[%c0, %c0_0] : memref<16x16xf32, #tpu.memory_space<vmem>>, vector<16x16xf32>
    %c0_1 = arith.constant 0 : index
    %c0_2 = arith.constant 0 : index
    %c0_3 = arith.constant 0 : index
    %1 = vector.load %arg2[%c0_1, %c0_2, %c0_3] : memref<4x8x32xf32, #tpu.memory_space<vmem>>, vector<4x8x32xf32>
    %2 = vector.shape_cast %1 : vector<4x8x32xf32> to vector<32x32xf32>
    %3 = vector.extract_strided_slice %2 {offsets = [0, 0], sizes = [32, 16], strides = [1, 1]} : vector<32x32xf32> to vector<32x16xf32>
    %cst = arith.constant dense<0.000000e+00> : vector<32x16xf32>
    %4 = tpu.matmul %3, %0, %cst {dimension_numbers = #tpu.dot_dimension_numbers<[1], [0], [0], [1], [0, 0, 1, 1], [], []>, precision = #tpu.contract_precision<fp32>} : vector<32x16xf32>, vector<16x16xf32>, vector<32x16xf32> -> vector<32x16xf32>
    %5 = vector.shape_cast %4 : vector<32x16xf32> to vector<4x8x16xf32>
    %6 = vector.extract_strided_slice %5 {offsets = [0, 0, 0], sizes = [4, 8, 8], strides = [1, 1, 1]} : vector<4x8x16xf32> to vector<4x8x8xf32>
    %c0_4 = arith.constant 0 : index
    %c0_5 = arith.constant 0 : index
    %c0_6 = arith.constant 0 : index
    %c0_7 = arith.constant 0 : index
    %7 = vector.load %arg3[%c0_4, %c0_5, %c0_6, %c0_7] : memref<4x4x8x8xf32, #tpu.memory_space<vmem>>, vector<4x1x8x8xf32>
    %8 = vector.shape_cast %7 : vector<4x1x8x8xf32> to vector<4x8x8xf32>
    %9 = vector.shape_cast %6 : vector<4x8x8xf32> to vector<4x1x8x8xf32>
    tpu.vector_store %arg3[%c0_4, %c0_5, %c0_6, %c0_7], %9 {strides = array<i32>} : memref<4x4x8x8xf32, #tpu.memory_space<vmem>>, vector<4x1x8x8xf32>,
    %10 = vector.extract_strided_slice %5 {offsets = [0, 0, 8], sizes = [4, 8, 8], strides = [1, 1, 1]} : vector<4x8x16xf32> to vector<4x8x8xf32>
    %c0_8 = arith.constant 0 : index
    %c1 = arith.constant 1 : index
    %c0_9 = arith.constant 0 : index
    %c0_10 = arith.constant 0 : index
    %11 = vector.load %arg3[%c0_8, %c1, %c0_9, %c0_10] : memref<4x4x8x8xf32, #tpu.memory_space<vmem>>, vector<4x1x8x8xf32>
    %12 = vector.shape_cast %11 : vector<4x1x8x8xf32> to vector<4x8x8xf32>
    %13 = vector.shape_cast %10 : vector<4x8x8xf32> to vector<4x1x8x8xf32>
    tpu.vector_store %arg3[%c0_8, %c1, %c0_9, %c0_10], %13 {strides = array<i32>} : memref<4x4x8x8xf32, #tpu.memory_space<vmem>>, vector<4x1x8x8xf32>,
    %14 = vector.extract_strided_slice %2 {offsets = [0, 16], sizes = [32, 16], strides = [1, 1]} : vector<32x32xf32> to vector<32x16xf32>
    %cst_11 = arith.constant dense<0.000000e+00> : vector<32x16xf32>
    %15 = tpu.matmul %14, %0, %cst_11 {dimension_numbers = #tpu.dot_dimension_numbers<[1], [0], [0], [1], [0, 0, 1, 1], [], []>, precision = #tpu.contract_precision<fp32>} : vector<32x16xf32>, vector<16x16xf32>, vector<32x16xf32> -> vector<32x16xf32>
    %16 = vector.shape_cast %15 : vector<32x16xf32> to vector<4x8x16xf32>
    %17 = vector.extract_strided_slice %16 {offsets = [0, 0, 0], sizes = [4, 8, 8], strides = [1, 1, 1]} : vector<4x8x16xf32> to vector<4x8x8xf32>
    %c0_12 = arith.constant 0 : index
    %c2 = arith.constant 2 : index
    %c0_13 = arith.constant 0 : index
    %c0_14 = arith.constant 0 : index
    %18 = vector.load %arg3[%c0_12, %c2, %c0_13, %c0_14] : memref<4x4x8x8xf32, #tpu.memory_space<vmem>>, vector<4x1x8x8xf32>
    %19 = vector.shape_cast %18 : vector<4x1x8x8xf32> to vector<4x8x8xf32>
    %20 = vector.shape_cast %17 : vector<4x8x8xf32> to vector<4x1x8x8xf32>
    tpu.vector_store %arg3[%c0_12, %c2, %c0_13, %c0_14], %20 {strides = array<i32>} : memref<4x4x8x8xf32, #tpu.memory_space<vmem>>, vector<4x1x8x8xf32>,
    %21 = vector.extract_strided_slice %16 {offsets = [0, 0, 8], sizes = [4, 8, 8], strides = [1, 1, 1]} : vector<4x8x16xf32> to vector<4x8x8xf32>
    %c0_15 = arith.constant 0 : index
    %c3 = arith.constant 3 : index
    %c0_16 = arith.constant 0 : index
    %c0_17 = arith.constant 0 : index
    %22 = vector.load %arg3[%c0_15, %c3, %c0_16, %c0_17] : memref<4x4x8x8xf32, #tpu.memory_space<vmem>>, vector<4x1x8x8xf32>
    %23 = vector.shape_cast %22 : vector<4x1x8x8xf32> to vector<4x8x8xf32>
    %24 = vector.shape_cast %21 : vector<4x8x8xf32> to vector<4x1x8x8xf32>
    tpu.vector_store %arg3[%c0_15, %c3, %c0_16, %c0_17], %24 {strides = array<i32>} : memref<4x4x8x8xf32, #tpu.memory_space<vmem>>, vector<4x1x8x8xf32>,
    return
  }
  func.func @transform_0(%arg0: i32) -> (i32, i32) {
    %c0_i32 = arith.constant 0 : i32
    %c0_i32_0 = arith.constant 0 : i32
    %c0_i32_1 = arith.constant 0 : i32
    return %c0_i32, %c0_i32_0 : i32, i32
  }
  func.func @transform_1(%arg0: i32) -> (i32, i32, i32) {
    %c0_i32 = arith.constant 0 : i32
    %c0_i32_0 = arith.constant 0 : i32
    %c0_i32_1 = arith.constant 0 : i32
    return %arg0, %c0_i32, %c0_i32_0 : i32, i32, i32
  }
  func.func @transform_2(%arg0: i32) -> (i32, i32, i32, i32) {
    %c0_i32 = arith.constant 0 : i32
    %c0_i32_0 = arith.constant 0 : i32
    %c0_i32_1 = arith.constant 0 : i32
    %c0_i32_2 = arith.constant 0 : i32
    return %arg0, %c0_i32, %c0_i32_0, %c0_i32_1 : i32, i32, i32, i32
  }
}

</mosaic_0001>

<bundles_post_ra>
// kernel: tpu_custom_call.1
= control target key start
LH: loop header
LB: loop body
LE: loop exit
PB: predicated region body
PF: predicated region fallthrough
CT: control target
= control target key end

     0   :  { %7 = vsyncpa [#allocation3], 0  ;;  %s2301_s0 = inlined_call_operand.hbm [shape: f32[16,16], index: 0, kind: input, shape index: {}]   ;;  %s2302_s1 = inlined_call_operand.hbm [shape: f32[8,8,32], index: 1, kind: input, shape index: {}]   ;;  %s2303_s2 = inlined_call_operand.hbm [shape: f32[8,4,8,8], index: 2, kind: output, shape index: {}]  }
   0x1   :  { %8 = vsyncpa [#allocation6], 0 }
   0x2   :  { %10 = vsyncpa [#allocation6 + $0x1], 0 }
   0x3   :  { %11 = vsyncpa [#allocation4], 0 }
   0x4   :  { %13 = vsyncpa [#allocation4 + $0x1], 0  ;;  %s1977_s9 = smov 0   ;;  %s1979_s10 = smov 0  }
   0x5   :  { %s1981_s11 = smov 0   ;;  %s1983_s12 = smov 0  }
   0x6 LB: > { %s1998_s13 = sadd.s32 4294967295, %s1951_s12   ;;  %s1542_s14 = sadd.s32 4294967294, %s1951_s12   ;;  %s1951_s12 = sphi %s1983_s12, %s2325_s12   ;;  %s1947_s11 = sphi %s1981_s11, %s2324_s11   ;;  %s1943_s10 = sphi %s1979_s10, %s2323_s10   ;;  %s1939_s9 = sphi %s1977_s9, %s2322_s9  }
   0x7   : > { %p60_p0 = scmp.ne.s32.totalorder %s1943_s10, %s1939_s9  ;;  %p2304_p1 = scmp.eq.s32.totalorder %s1998_s13, 0 }
   0x8   : > { %p90_p3 = scmp.eq.s32.totalorder %s1542_s14, 1  ;;  %p1543_p5 = scmp.ge.s32.totalorder %s1951_s12, 1 }
   0x9   : > { %p2007_p4 = por %p2304_p1, %p60_p0  ;;  %p97_p7 = scmp.lt.s32.totalorder %s1951_s12, 3 }
   0xa   : > { %p2012_p6 = por %p90_p3, %p60_p0  ;;  %s1953_s18 = smov [#allocation2]  }
   0xb   : > { %s2308_s15 = scalar_select %p2007_p4, 1, 0 }
   0xc   : > { %s2309_s16 = scalar_select %p2012_p6, 1, 0 }
   0xd   : > { %p2017_p8 = pnand %p1543_p5, %p97_p7  ;;  %s109_s19 = sshll.u32 %s1953_s18, 4  ;;  %s110_s19 = int_to_ptr.vmem [resolvable:$true] %s109_s19 }
   0xe   : > { %s2031_s21 = sadd.s32 1, %s1951_s12   ;;  %s47_s22 = sadd.s32 1, %s1947_s11 }
   0xf   : > { %s2310_s17 = scalar_select %p2017_p8, 1, 0 }
  0x10   : > { %p1774_p9 = pneg %p2017_p8  ;;  %s44_s23 = ssub.s32 %s1951_s12, %s2031_s21 }
  0x11   : > { %s1840_s24 = scalar_lea.vmem %s110_s19, 256  ;;  %p1848_p5 = scmp.lt.s32.totalorder %s110_s19, %s110_s19 }
  0x12   : > { %p2026_p11 = pnand %p1774_p9, %p2304_p1  ;;  %p1841_p13 = scmp.ne.s32.totalorder %s110_s19, %s1840_s24 }
  0x13   : > { %p1849_p7 = scmp.lt.s32.totalorder %s1840_s24, %s1840_s24 }
  0x14   : > { %p1831_p12 = pneg %p2026_p11 }
  0x15   : > { %p1850_p10 = por %p1849_p7, %p1848_p5 }
  0x16   : > { %p1843_p0 = pnand %p1841_p13, %p1831_p12 }
  0x18   : > { %p1844_p3 = pneg %p1843_p0 }
  0x1a   : > { %p1851_p2 = pnand %p1850_p10, %p1844_p3 }
  0x1c   : > { %1854 = shalt.err (!%p1851_p2)
}
  0x1d   : > { %s1954_s25 = smov 128   ;;  %s1955_s26 = smov 8  }
  0x1e   : > { %1777 = dma.hbm_to_vmem [thread:$0]  (!%p2026_p11), %s2301_s0, 256, %s110_s19, [#allocation3], %s1954_s25, %s1954_s25, %s1955_s26  }
  0x1f   : > { %p45_p2 = scmp.eq.s32.totalorder %s44_s23, 0  ;;  %p54_p9 = scmp.ne.s32.totalorder %s1947_s11, %s1943_s10 }
  0x20   : > { %p55_p10 = scmp.eq.s32.totalorder %s1951_s12, 0  ;;  %p1787_p12 = scmp.lt.s32.totalorder %s1951_s12, 2 }
  0x21   : > { %s2051_s29 = scalar_select %p45_p2, %s1947_s11, %s47_s22  }
  0x22   : > { %p56_p13 = por %p55_p10, %p54_p9  ;;  %p2312_p0 = scmp.eq.s32.totalorder %s1998_s13, 1 }
  0x23   : > { %s123_s3 = sand.u32 1, %s1947_s11   ;;  %s1571_s4 = sshll.u32 %s1951_s12, 9 }
  0x24   : > { %p2055_p3 = por %p2312_p0, %p54_p9  ;;  %s1546_s5 = sshll.u32 %s123_s3, 5 }
  0x25   : > { %s2064_s8 = scalar_lea.hbm %s2302_s1, %s1571_s4  ;;  %s127_s14 = scalar_lea.vmem [#allocation5], %s1546_s5 }
  0x26   : > { %s2313_s30 = scalar_select %p2055_p3, 1, 0 }
  0x27   : > { %s134_s18 = sshll.u32 %s127_s14, 4  ;;  %p2066_p11 = pnand %p1787_p12, %p56_p13  ;;  %s2070_s18 = int_to_ptr.vmem [resolvable:$true] %s134_s18 }
  0x28   : > { %s2072_s20 = scalar_lea.sflag [#allocation6], %s123_s3  ;;  %s1855_s22 = scalar_lea.hbm %s2064_s8, 512 }
  0x29   : > { %p1856_p5 = scmp.ne.s32.totalorder %s2064_s8, %s1855_s22  ;;  %p1857_p7 = pneg %p2066_p11 }
  0x2a   : > { %s1860_s27 = scalar_lea.hbm %s2302_s1, 1024  ;;  %p1861_p10 = scmp.lt.s32.totalorder %s2064_s8, %s2302_s1 }
  0x2b   : > { %p1858_p2 = pnand %p1857_p7, %p1856_p5  ;;  %p1862_p12 = scmp.lt.s32.totalorder %s1860_s27, %s1855_s22 }
  0x2d   : > { %p1859_p9 = pneg %p1858_p2  ;;  %p1863_p13 = por %p1862_p12, %p1861_p10 }
  0x2f   : > { %p1864_p0 = pnand %p1863_p13, %p1859_p9 }
  0x31   : > { %1867 = shalt.err (!%p1864_p0)
}
  0x32   : > { %s1868_s3 = scalar_lea.vmem %s2070_s18, 512  ;;  %s1956_s5 = smov [#allocation5]  }
  0x33   : > { %p1869_p1 = scmp.ne.s32.totalorder %s2070_s18, %s1868_s3  ;;  %s1873_s6 = sshll.u32 %s1956_s5, 4  ;;  %s1874_s6 = int_to_ptr.vmem [resolvable:$false] %s1873_s6 }
  0x34   : > { %s1875_s7 = scalar_lea.vmem %s1874_s6, 1024  ;;  %p1876_p2 = scmp.lt.s32.totalorder %s2070_s18, %s1874_s6 }
  0x35   : > { %p1871_p6 = pnand %p1869_p1, %p1857_p7  ;;  %p1877_p3 = scmp.lt.s32.totalorder %s1875_s7, %s1868_s3 }
  0x37   : > { %p1872_p5 = pneg %p1871_p6  ;;  %p1878_p4 = por %p1877_p3, %p1876_p2 }
  0x39   : > { %p1879_p8 = pnand %p1878_p4, %p1872_p5 }
  0x3b   : > { %1882 = shalt.err (!%p1879_p8)
}
  0x3c   : > { %1781 = dma.hbm_to_vmem [thread:$0]  (!%p2066_p11), %s2064_s8, 512, %s2070_s18, %s2072_s20, %s1954_s25, %s1954_s25, %s1955_s26  }
  0x3d   : > { %p2315_p1 = scmp.ne.s32.totalorder %s2310_s17, 0 }
  0x3e   : > { %p2316_p6 = scmp.eq.s32.totalorder (!%p2315_p1), %s1998_s13, 0 }
  0x3f   : > { %146 = sbr.rel (%p2315_p1) target bundleno = 552 (0x228), region = 28 }
  0x44   : > { %1926 = dma.done.wait (%p2316_p6), [#allocation3], 256   ;;  %p2317_p7 = pmov %p2316_p6 }
  0x45   : > { %s2103_s14 = sand.u32 1, %s1943_s10   ;;  %p2318_p4 = scmp.ne.s32.totalorder %s2308_s15, 0 }
  0x46   : > { %1928 = vsyncadd (%p2317_p7), [#allocation3], 4294967040  ;;  %s1551_s19 = sshll.u32 %s2103_s14, 5  ;;  %s153_s22 = scalar_lea.sflag [#allocation6], %s2103_s14 }
  0x47   : > { %s156_s23 = scalar_lea.vmem [#allocation5], %s1551_s19 }
  0x48   : > { %1930 = dma.done.wait (%p2318_p4), %s153_s22, 512  }
  0x49   : > { %1932 = vsyncadd (%p2318_p4), %s153_s22, 4294966784  ;;  %vm185_vm0 = vcmask 130048   ;;  %v183_v0 = vld [vmem:[%s156_s23 + $0x10] sm:$0xff]  ;;  %v181_v1 = vld [vmem:[%s156_s23] sm:$0xff]  ;;  %s1957_s17 = smov 112   ;;  %s1552_s15 = sshll.u32 %s2103_s14, 7 }
  0x4a   : > { %v184_v2 = vld [vmem:[%s156_s23 + $0x18] sm:$0xff]  ;;  %816 = vrot.lane.b32.xlu1 %v183_v0, %s1957_s17  ;;  %v193_v3 = vsel %vm185_vm0, %v183_v0, 0  ;;  %812 = vrot.lane.b32.xlu0 %v181_v1, %s1957_s17  ;;  %v187_v4 = vsel %vm185_vm0, %v181_v1, 0  ;;  %v182_v6 = vld [vmem:[%s156_s23 + $0x8] sm:$0xff]  ;;  %v179_v8 = vld [vmem:[#allocation2] sm:$0xff]  ;;  %vm786_vm1 = vcmask 64512  }
  0x4b   : > { %v196_v5 = vsel %vm185_vm0, %v184_v2, 0  ;;  %v180_v7 = vld [vmem:[#allocation2 + $0x8] sm:$0xff]  ;;  %v2114_v9 = vand.u32 4294901760, %v193_v3  ;;  %v2116_v10 = vand.u32 4294901760, %v187_v4  ;;  %v190_v12 = vsel %vm185_vm0, %v182_v6, 0  ;;  %s2209_s25 = scalar_lea.vmem [#allocation7], %s1552_s15 }
  0x4c   : > { %v2118_v11 = vand.u32 4294901760, %v196_v5  ;;  %v2121_v13 = vand.u32 4294901760, %v190_v12  ;;  %v2123_v14 = vand.u32 4294901760, %v180_v7  ;;  %v2125_v15 = vand.u32 4294901760, %v179_v8  ;;  %s1958_s26 = smov 120   ;;  %s1573_s8 = sshll.u32 %s1998_s13, 11 }
  0x4d   : > { %v286_v16 = vsub.f32 %v193_v3, %v2114_v9  ;;  %v266_v17 = vsub.f32 %v187_v4, %v2116_v10  ;;  %1660 = vmatprep.mubr.f32.mxu1 %v2116_v10  ;;  %s1457_s18 = sshll.u32 %s2209_s25, 4  ;;  %s2252_s27 = scalar_lea.hbm %s2303_s2, %s1573_s8  ;;  %s2254_s18 = int_to_ptr.vmem [resolvable:$true] %s1457_s18 }
  0x4e   : > { %v2130_v18 = vsub.f32 %v196_v5, %v2118_v11  ;;  %818 = vrot.lane.b32.xlu1 %v184_v2, %s1957_s17  ;;  %v276_v19 = vsub.f32 %v190_v12, %v2121_v13  ;;  %814 = vrot.lane.b32.xlu0 %v182_v6, %s1957_s17  ;;  %v2135_v20 = vsub.f32 %v180_v7, %v2123_v14  ;;  %s1443_s13 = scalar_lea.sflag [#allocation4], %s2103_s14  ;;  %s1883_s28 = scalar_lea.vmem %s2254_s18, 2048 }
  0x4f   : > { %v2138_v21 = vsub.f32 %v179_v8, %v2125_v15  ;;  %1646 = vmatprep.subr.mxu0 %v2123_v14  ;;  %v267_v22 = vand.u32 4294901760, %v266_v17  ;;  %v287_v23 = vand.u32 4294901760, %v286_v16  ;;  %p1884_p8 = scmp.ne.s32.totalorder %s2254_s18, %s1883_s28  ;;  %p2319_p3 = scmp.ne.s32.totalorder %s2313_s30, 0 }
  0x50   : > { %v297_v24 = vand.u32 4294901760, %v2130_v18  ;;  %1647 = vmatpush3.msra.mxu0 %v2123_v14  ;;  %v2144_v25 = vand.u32 4294901760, %v2135_v20  ;;  %v277_v26 = vand.u32 4294901760, %v276_v19  ;;  %s1959_s4 = smov [#allocation7]  }
  0x51   : > { %v2147_v27 = vand.u32 4294901760, %v2138_v21  ;;  %1648 = vmatprep.subr.mxu0 %v2125_v15  ;;  %v268_v28 = vsub.f32 %v266_v17, %v267_v22  ;;  %v288_v29 = vsub.f32 %v286_v16, %v287_v23  ;;  %p1885_p11 = pnand %p1884_p8, %p2319_p3  ;;  %s1887_s3 = sshll.u32 %s1959_s4, 4  ;;  %s1888_s3 = int_to_ptr.vmem [resolvable:$false] %s1887_s3 }
  0x52   : > { %v337_v30 = vsub.f32 %v2135_v20, %v2144_v25  ;;  %1649 = vmatpush3.msra.mxu0 %v2125_v15  ;;  %v278_v31 = vsub.f32 %v276_v19, %v277_v26  ;;  %v298_v33 = vsub.f32 %v2130_v18, %v297_v24  ;;  %s1889_s5 = scalar_lea.vmem %s1888_s3, 4096  ;;  %p1890_p10 = scmp.lt.s32.totalorder %s2254_s18, %s1888_s3 }
  0x53   : > { %v344_v32 = vsub.f32 %v2138_v21, %v2147_v27  ;;  %v269_v34 = vand.u32 4294901760, %v268_v28  ;;  %v289_v35 = vand.u32 4294901760, %v288_v29  ;;  %1666 = vmatprep.subr.mxu0 %v2135_v20  ;;  %p1886_p9 = pneg %p1885_p11  ;;  %p1891_p12 = scmp.lt.s32.totalorder %s1889_s5, %s1883_s28 }
  0x54   : > { %v338_v36 = vand.u32 4294901760, %v337_v30  ;;  %v279_v37 = vand.u32 4294901760, %v278_v31  ;;  %v299_v39 = vand.u32 4294901760, %v298_v33 }
  0x55   : > { %v345_v38 = vand.u32 4294901760, %v344_v32  ;;  %1650 = vmatprep.mubr.f32.mxu0 %v269_v34  ;;  %p1892_p13 = por %p1891_p12, %p1890_p10 }
  0x56   : > { %1656 = vmatprep.subr.mxu1 %v338_v36  ;;  %1651 = vmatmul.mubr.f32.vlgmr.msra.gmra.mxu0 %v279_v37 }
  0x57   : > { %1657 = vmatpush3.msra.mxu1 %v338_v36  ;;  %1653 = vmatprep.mubr.f32.mxu0 %v289_v35  ;;  %p1893_p0 = pnand %p1892_p13, %p1886_p9 }
  0x58   : > { %1658 = vmatprep.subr.mxu1 %v345_v38  ;;  %1667 = vmatpush3.msra.mxu0 %v2135_v20 }
  0x59   : > { %1659 = vmatpush3.msra.mxu1 %v345_v38  ;;  %1668 = vmatprep.subr.mxu0 %v2138_v21 }
  0x5a   : > { %1661 = vmatmul.mubr.f32.vlgmr.msra.gmra.mxu1 %v2121_v13  ;;  %1654 = vmatmul.mubr.f32.gmra.mxu0 %v299_v39 }
  0x5b   : > { %1663 = vmatprep.mubr.f32.mxu1 %v2114_v9  ;;  %1676 = vmatprep.subr.mxu1 %v2123_v14 }
  0x5c   : > { %1669 = vmatpush3.msra.mxu0 %v2138_v21  ;;  %1670 = vmatprep.mubr.f32.mxu0 %v266_v17 }
  0x5d   : > { %1677 = vmatpush3.msra.mxu1 %v2123_v14  ;;  %1686 = vmatprep.subr.mxu0 %v2144_v25 }
  0x5e   : > { %1664 = vmatmul.mubr.f32.gmra.mxu1 %v2118_v11  ;;  %1671 = vmatmul.mubr.f32.vlgmr.msra.gmra.mxu0 %v276_v19 }
  0x5f   : > { %1678 = vmatprep.subr.mxu1 %v2125_v15  ;;  %1680 = vmatprep.mubr.f32.mxu1 %v267_v22 }
  0x60   : > { %1679 = vmatpush3.msra.mxu1 %v2125_v15  ;;  %1673 = vmatprep.mubr.f32.mxu0 %v286_v16 }
  0x61   : > { %1687 = vmatpush3.msra.mxu0 %v2144_v25  ;;  %1696 = vmatprep.subr.mxu1 %v2123_v14 }
  0x62   : > { %1681 = vmatmul.mubr.f32.vlgmr.msra.gmra.mxu1 %v277_v26  ;;  %1674 = vmatmul.mubr.f32.gmra.mxu0 %v2130_v18 }
  0x63   : > { %1683 = vmatprep.mubr.f32.mxu1 %v287_v23  ;;  %1688 = vmatprep.subr.mxu0 %v2147_v27 }
  0x64   : > { %1689 = vmatpush3.msra.mxu0 %v2147_v27  ;;  %1690 = vmatprep.mubr.f32.mxu0 %v2116_v10 }
  0x65   : > { %1697 = vmatpush3.msra.mxu1 %v2123_v14  ;;  %1706 = vmatprep.subr.mxu0 %v2123_v14 }
  0x66   : > { %1684 = vmatmul.mubr.f32.gmra.mxu1 %v297_v24  ;;  %1691 = vmatmul.mubr.f32.vlgmr.msra.gmra.mxu0 %v2121_v13 }
  0x67   : > { %1698 = vmatprep.subr.mxu1 %v2125_v15  ;;  %1700 = vmatprep.mubr.f32.mxu1 %v2116_v10 }
  0x68   : > { %1699 = vmatpush3.msra.mxu1 %v2125_v15  ;;  %1693 = vmatprep.mubr.f32.mxu0 %v2114_v9 }
  0x69   : > { %1716 = vmatprep.subr.mxu1 %v338_v36  ;;  %1707 = vmatpush3.msra.mxu0 %v2123_v14 }
  0x6a   : > { %1701 = vmatmul.mubr.f32.vlgmr.msra.gmra.mxu1 %v2121_v13  ;;  %1694 = vmatmul.mubr.f32.gmra.mxu0 %v2118_v11 }
  0x6b   : > { %1703 = vmatprep.mubr.f32.mxu1 %v2114_v9  ;;  %1717 = vmatpush3.msra.mxu1 %v338_v36 }
  0x6c   : > { %1718 = vmatprep.subr.mxu1 %v345_v38  ;;  %1708 = vmatprep.subr.mxu0 %v2125_v15 }
  0x6d   : > { %1719 = vmatpush3.msra.mxu1 %v345_v38  ;;  %1709 = vmatpush3.msra.mxu0 %v2125_v15 }
  0x6e   : > { %1704 = vmatmul.mubr.f32.gmra.mxu1 %v2118_v11  ;;  %1736 = vmatprep.subr.mxu1 %v2123_v14 }
  0x6f   : > { %1726 = vmatprep.subr.mxu0 %v2135_v20 }
  0xbc   : > { %v817_v40 = vpop.permute.xlu1 %816  ;;  %v813_v41 = vpop.permute.xlu0 %812 }
  0xbd   : > { %v824_v42 = vsel %vm185_vm0, %v817_v40, 0  ;;  %v820_v43 = vsel %vm185_vm0, %v813_v41, 0 }
  0xbe   : > { %v915_v44 = vand.u32 4294901760, %v824_v42  ;;  %v895_v45 = vand.u32 4294901760, %v820_v43 }
  0xc0   : > { %v916_v46 = vsub.f32 %v824_v42, %v915_v44  ;;  %v896_v47 = vsub.f32 %v820_v43, %v895_v45  ;;  %v819_v48 = vpop.permute.xlu1 %818  ;;  %v815_v49 = vpop.permute.xlu0 %814  ;;  %1720 = vmatprep.mubr.f32.mxu1 %v895_v45 }
  0xc1   : > { %v826_v50 = vsel %vm185_vm0, %v819_v48, 0  ;;  %v822_v51 = vsel %vm185_vm0, %v815_v49, 0 }
  0xc2   : > { %v897_v52 = vand.u32 4294901760, %v896_v47  ;;  %v925_v53 = vand.u32 4294901760, %v826_v50  ;;  %v905_v54 = vand.u32 4294901760, %v822_v51  ;;  %v917_v55 = vand.u32 4294901760, %v916_v46 }
  0xc4   : > { %v926_v56 = vsub.f32 %v826_v50, %v925_v53  ;;  %v906_v57 = vsub.f32 %v822_v51, %v905_v54  ;;  %1721 = vmatmul.mubr.f32.vlgmr.msra.gmra.mxu1 %v905_v54  ;;  %v898_v58 = vsub.f32 %v896_v47, %v897_v52  ;;  %v918_v62 = vsub.f32 %v916_v46, %v917_v55 }
  0xc5   : > { %1723 = vmatprep.mubr.f32.mxu1 %v915_v44  ;;  %1737 = vmatpush3.msra.mxu1 %v2123_v14 }
  0xc6   : > { %v927_v59 = vand.u32 4294901760, %v926_v56  ;;  %v907_v60 = vand.u32 4294901760, %v906_v57  ;;  %v899_v61 = vand.u32 4294901760, %v898_v58  ;;  %1738 = vmatprep.subr.mxu1 %v2125_v15  ;;  %v919_v2 = vand.u32 4294901760, %v918_v62 }
  0xc7   : > { %1739 = vmatpush3.msra.mxu1 %v2125_v15 }
  0xc8   : > { %v908_v63 = vsub.f32 %v906_v57, %v907_v60  ;;  %1710 = vmatprep.mubr.f32.mxu0 %v899_v61  ;;  %1724 = vmatmul.mubr.f32.gmra.mxu1 %v925_v53  ;;  %v928_v1 = vsub.f32 %v926_v56, %v927_v59 }
  0xc9   : > { %1740 = vmatprep.mubr.f32.mxu1 %v897_v52  ;;  %1756 = vmatprep.subr.mxu1 %v2123_v14 }
  0xca   : > { %v909_v0 = vand.u32 4294901760, %v908_v63  ;;  %v929_v3 = vand.u32 4294901760, %v928_v1 }
  0xcc   : > { %1711 = vmatmul.mubr.f32.vlgmr.msra.gmra.mxu0 %v909_v0  ;;  %1741 = vmatmul.mubr.f32.vlgmr.msra.gmra.mxu1 %v907_v60 }
  0xcd   : > { %1727 = vmatpush3.msra.mxu0 %v2135_v20  ;;  %1713 = vmatprep.mubr.f32.mxu0 %v919_v2 }
  0xce   : > { %1743 = vmatprep.mubr.f32.mxu1 %v917_v55  ;;  %1728 = vmatprep.subr.mxu0 %v2138_v21 }
  0xcf   : > { %1729 = vmatpush3.msra.mxu0 %v2138_v21  ;;  %1757 = vmatpush3.msra.mxu1 %v2123_v14 }
  0xd0   : > { %1714 = vmatmul.mubr.f32.gmra.mxu0 %v929_v3  ;;  %1744 = vmatmul.mubr.f32.gmra.mxu1 %v927_v59 }
  0xd1   : > { %1730 = vmatprep.mubr.f32.mxu0 %v896_v47  ;;  %1760 = vmatprep.mubr.f32.mxu1 %v895_v45 }
  0xd2   : > { %1758 = vmatprep.subr.mxu1 %v2125_v15  ;;  %1746 = vmatprep.subr.mxu0 %v2144_v25 }
  0xd3   : > { %1759 = vmatpush3.msra.mxu1 %v2125_v15 }
  0xd4   : > { %1731 = vmatmul.mubr.f32.vlgmr.msra.gmra.mxu0 %v906_v57  ;;  %1761 = vmatmul.mubr.f32.vlgmr.msra.gmra.mxu1 %v905_v54 }
  0xd5   : > { %1747 = vmatpush3.msra.mxu0 %v2144_v25  ;;  %1733 = vmatprep.mubr.f32.mxu0 %v916_v46 }
  0xd6   : > { %1763 = vmatprep.mubr.f32.mxu1 %v915_v44  ;;  %1748 = vmatprep.subr.mxu0 %v2147_v27 }
  0xd7   : > { %1749 = vmatpush3.msra.mxu0 %v2147_v27 }
  0xd8   : > { %1734 = vmatmul.mubr.f32.gmra.mxu0 %v926_v56  ;;  %1764 = vmatmul.mubr.f32.gmra.mxu1 %v925_v53 }
  0xd9   : > { %1750 = vmatprep.mubr.f32.mxu0 %v895_v45 }
  0xdc   : > { %1751 = vmatmul.mubr.f32.vlgmr.msra.gmra.mxu0 %v905_v54 }
  0xdd   : > { %1753 = vmatprep.mubr.f32.mxu0 %v915_v44 }
  0xe0   : > { %1754 = vmatmul.mubr.f32.gmra.mxu0 %v925_v53 }
 0x116   : > { %v1652_v4 = vpop.f32.mrf.mxu0 }
 0x118   : > { %v271_v5 = vpop.f32.mrf.mxu0 }
 0x11a   : > { %v1662_v6 = vpop.f32.mrf.mxu1  ;;  %v1655_v7 = vpop.f32.mrf.mxu0 }
 0x11b   : > { %v389_v8 = vadd.f32 %v1662_v6, %v1652_v4 }
 0x11c   : > { %v382_v9 = vpop.f32.mrf.mxu1  ;;  %v291_v10 = vpop.f32.mrf.mxu0 }
 0x11d   : > { %v383_v11 = vadd.f32 %v382_v9, %v271_v5 }
 0x11e   : > { %v1665_v12 = vpop.f32.mrf.mxu1  ;;  %v1672_v13 = vpop.f32.mrf.mxu0 }
 0x11f   : > { %v401_v14 = vadd.f32 %v1665_v12, %v1655_v7  ;;  %v484_v15 = vadd.f32 %v1672_v13, %v389_v8 }
 0x120   : > { %v394_v16 = vpop.f32.mrf.mxu1  ;;  %v476_v17 = vpop.f32.mrf.mxu0 }
 0x121   : > { %v395_v18 = vadd.f32 %v394_v16, %v291_v10  ;;  %v477_v19 = vadd.f32 %v476_v17, %v383_v11 }
 0x122   : > { %v1682_v20 = vpop.f32.mrf.mxu1  ;;  %v1675_v21 = vpop.f32.mrf.mxu0 }
 0x123   : > { %v581_v22 = vadd.f32 %v1682_v20, %v484_v15  ;;  %v498_v23 = vadd.f32 %v1675_v21, %v401_v14 }
 0x124   : > { %v572_v24 = vpop.f32.mrf.mxu1  ;;  %v490_v25 = vpop.f32.mrf.mxu0 }
 0x125   : > { %v573_v26 = vadd.f32 %v572_v24, %v477_v19  ;;  %v491_v27 = vadd.f32 %v490_v25, %v395_v18 }
 0x126   : > { %v1685_v28 = vpop.f32.mrf.mxu1  ;;  %v1692_v29 = vpop.f32.mrf.mxu0 }
 0x127   : > { %v597_v30 = vadd.f32 %v1685_v28, %v498_v23  ;;  %v680_v31 = vadd.f32 %v1692_v29, %v581_v22 }
 0x128   : > { %v588_v32 = vpop.f32.mrf.mxu1  ;;  %v673_v33 = vpop.f32.mrf.mxu0 }
 0x129   : > { %v589_v34 = vadd.f32 %v588_v32, %v491_v27  ;;  %v674_v35 = vadd.f32 %v673_v33, %v573_v26 }
 0x12a   : > { %v1702_v36 = vpop.f32.mrf.mxu1  ;;  %v1695_v37 = vpop.f32.mrf.mxu0 }
 0x12b   : > { %v771_v38 = vadd.f32 %v1702_v36, %v680_v31  ;;  %v692_v39 = vadd.f32 %v1695_v37, %v597_v30 }
 0x12c   : > { %v764_v40 = vpop.f32.mrf.mxu1  ;;  %v685_v41 = vpop.f32.mrf.mxu0 }
 0x12d   : > { %788 = vst.msk [vmem:[%s2209_s25 + $0x20] sm:$0xff] %vm786_vm1, %v771_v38  ;;  %v765_v42 = vadd.f32 %v764_v40, %v674_v35  ;;  %v686_v43 = vadd.f32 %v685_v41, %v589_v34  ;;  %797 = vrot.lane.b32.xlu1 %v771_v38, %s1958_s26 }
 0x12e   : > { %v1705_v44 = vpop.f32.mrf.mxu1 }
 0x12f   : > { %787 = vst.msk [vmem:[%s2209_s25] sm:$0xff] %vm786_vm1, %v765_v42  ;;  %v783_v45 = vadd.f32 %v1705_v44, %v692_v39  ;;  %795 = vrot.lane.b32.xlu0 %v765_v42, %s1958_s26 }
 0x130   : > { %v776_v46 = vpop.f32.mrf.mxu1 }
 0x131   : > { %790 = vst.msk [vmem:[%s2209_s25 + $0x60] sm:$0xff] %vm786_vm1, %v783_v45  ;;  %v777_v47 = vadd.f32 %v776_v46, %v686_v43  ;;  %801 = vrot.lane.b32.xlu1 %v783_v45, %s1958_s26 }
 0x133   : > { %789 = vst.msk [vmem:[%s2209_s25 + $0x40] sm:$0xff] %vm786_vm1, %v777_v47  ;;  %799 = vrot.lane.b32.xlu0 %v777_v47, %s1958_s26 }
 0x184   : > { %v1722_v48 = vpop.f32.mrf.mxu1 }
 0x186   : > { %v1012_v49 = vpop.f32.mrf.mxu1 }
 0x188   : > { %v1725_v50 = vpop.f32.mrf.mxu1 }
 0x18a   : > { %v1024_v51 = vpop.f32.mrf.mxu1 }
 0x18c   : > { %v1712_v52 = vpop.f32.mrf.mxu0  ;;  %v1742_v53 = vpop.f32.mrf.mxu1 }
 0x18d   : > { %v1019_v61 = vadd.f32 %v1722_v48, %v1712_v52 }
 0x18e   : > { %v901_v54 = vpop.f32.mrf.mxu0  ;;  %v1202_v55 = vpop.f32.mrf.mxu1 }
 0x18f   : > { %v1013_v63 = vadd.f32 %v1012_v49, %v901_v54 }
 0x190   : > { %v1715_v56 = vpop.f32.mrf.mxu0  ;;  %v1745_v57 = vpop.f32.mrf.mxu1 }
 0x191   : > { %v1031_v3 = vadd.f32 %v1725_v50, %v1715_v56 }
 0x192   : > { %v921_v58 = vpop.f32.mrf.mxu0  ;;  %v1218_v59 = vpop.f32.mrf.mxu1 }
 0x193   : > { %v1025_v6 = vadd.f32 %v1024_v51, %v921_v58 }
 0x194   : > { %v1732_v60 = vpop.f32.mrf.mxu0  ;;  %v1762_v1 = vpop.f32.mrf.mxu1 }
 0x195   : > { %v1114_v0 = vadd.f32 %v1732_v60, %v1019_v61 }
 0x196   : > { %v1106_v62 = vpop.f32.mrf.mxu0  ;;  %v1394_v9 = vpop.f32.mrf.mxu1 }
 0x197   : > { %v1107_v4 = vadd.f32 %v1106_v62, %v1013_v63  ;;  %v1211_v8 = vadd.f32 %v1742_v53, %v1114_v0 }
 0x198   : > { %v1735_v2 = vpop.f32.mrf.mxu0  ;;  %v1765_v19 = vpop.f32.mrf.mxu1 }
 0x199   : > { %v1128_v7 = vadd.f32 %v1735_v2, %v1031_v3  ;;  %v1203_v13 = vadd.f32 %v1202_v55, %v1107_v4 }
 0x19a   : > { %v1120_v5 = vpop.f32.mrf.mxu0  ;;  %v1406_v29 = vpop.f32.mrf.mxu1 }
 0x19b   : > { %v1121_v11 = vadd.f32 %v1120_v5, %v1025_v6  ;;  %v1227_v17 = vadd.f32 %v1745_v57, %v1128_v7 }
 0x19c   : > { %v1752_v10 = vpop.f32.mrf.mxu0 }
 0x19d   : > { %v1310_v12 = vadd.f32 %v1752_v10, %v1211_v8  ;;  %v1219_v23 = vadd.f32 %v1218_v59, %v1121_v11 }
 0x19e   : > { %v1303_v14 = vpop.f32.mrf.mxu0 }
 0x19f   : > { %v1401_v15 = vadd.f32 %v1762_v1, %v1310_v12  ;;  %v1304_v16 = vadd.f32 %v1303_v14, %v1203_v13  ;;  %v798_v18 = vpop.permute.xlu1 %797 }
 0x1a0   : > { %v1755_v20 = vpop.f32.mrf.mxu0  ;;  %1554 = vst.msk [vmem:[%s2209_s25 + $0x28] sm:$0xff] %vm786_vm1, %v798_v18 }
 0x1a1   : > { %1558 = vst.msk [vmem:[%s2209_s25 + $0x30] sm:$0xff] %vm786_vm1, %v1401_v15  ;;  %v1395_v21 = vadd.f32 %v1394_v9, %v1304_v16  ;;  %v1322_v22 = vadd.f32 %v1755_v20, %v1227_v17  ;;  %1427 = vrot.lane.b32.xlu1 %v1401_v15, %s1958_s26  ;;  %v796_v24 = vpop.permute.xlu0 %795 }
 0x1a2   : > { %v1315_v25 = vpop.f32.mrf.mxu0  ;;  %1553 = vst.msk [vmem:[%s2209_s25 + $0x8] sm:$0xff] %vm786_vm1, %v796_v24 }
 0x1a3   : > { %1557 = vst.msk [vmem:[%s2209_s25 + $0x10] sm:$0xff] %vm786_vm1, %v1395_v21  ;;  %v1413_v26 = vadd.f32 %v1765_v19, %v1322_v22  ;;  %v1316_v27 = vadd.f32 %v1315_v25, %v1219_v23  ;;  %1425 = vrot.lane.b32.xlu0 %v1395_v21, %s1958_s26  ;;  %v802_v28 = vpop.permute.xlu1 %801 }
 0x1a4   : > { %1556 = vst.msk [vmem:[%s2209_s25 + $0x68] sm:$0xff] %vm786_vm1, %v802_v28 }
 0x1a5   : > { %1560 = vst.msk [vmem:[%s2209_s25 + $0x70] sm:$0xff] %vm786_vm1, %v1413_v26  ;;  %v1407_v30 = vadd.f32 %v1406_v29, %v1316_v27  ;;  %1431 = vrot.lane.b32.xlu1 %v1413_v26, %s1958_s26  ;;  %v800_v31 = vpop.permute.xlu0 %799 }
 0x1a6   : > { %1555 = vst.msk [vmem:[%s2209_s25 + $0x48] sm:$0xff] %vm786_vm1, %v800_v31 }
 0x1a7   : > { %1559 = vst.msk [vmem:[%s2209_s25 + $0x50] sm:$0xff] %vm786_vm1, %v1407_v30  ;;  %1429 = vrot.lane.b32.xlu0 %v1407_v30, %s1958_s26 }
 0x213   : > { %v1428_v32 = vpop.permute.xlu1 %1427 }
 0x214   : > { %1562 = vst.msk [vmem:[%s2209_s25 + $0x38] sm:$0xff] %vm786_vm1, %v1428_v32 }
 0x215   : > { %v1426_v33 = vpop.permute.xlu0 %1425 }
 0x216   : > { %1561 = vst.msk [vmem:[%s2209_s25 + $0x18] sm:$0xff] %vm786_vm1, %v1426_v33 }
 0x217   : > { %v1432_v34 = vpop.permute.xlu1 %1431 }
 0x218   : > { %1564 = vst.msk [vmem:[%s2209_s25 + $0x78] sm:$0xff] %vm786_vm1, %v1432_v34 }
 0x219   : > { %v1430_v35 = vpop.permute.xlu0 %1429 }
 0x21a   : > { %1563 = vst.msk [vmem:[%s2209_s25 + $0x58] sm:$0xff] %vm786_vm1, %v1430_v35 }
 0x21b   : > { %1896 = shalt.err (!%p1893_p0)
}
 0x21c   : > { %s1897_s6 = scalar_lea.hbm %s2252_s27, 2048  ;;  %s1901_s22 = scalar_lea.hbm %s2303_s2, 4096 }
 0x21d   : > { %p1898_p5 = scmp.ne.s32.totalorder %s2252_s27, %s1897_s6  ;;  %p1902_p6 = scmp.lt.s32.totalorder %s2252_s27, %s2303_s2 }
 0x21e   : > { %p1903_p7 = scmp.lt.s32.totalorder %s1901_s22, %s1897_s6 }
 0x21f   : > { %p1899_p2 = pnand %p1898_p5, %p2319_p3 }
 0x220   : > { %p1904_p4 = por %p1903_p7, %p1902_p6 }
 0x221   : > { %p1900_p1 = pneg %p1899_p2 }
 0x223   : > { %p1905_p8 = pnand %p1904_p4, %p1900_p1 }
 0x225   : > { %1908 = shalt.err (!%p1905_p8)
}
 0x226   : > { %s1960_s15 = smov 128   ;;  %s1961_s25 = smov 8  }
 0x227   : > { %1772 = dma.vmem_to_hbm [thread:$0]  (%p2319_p3), %s2254_s18, 2048, %s2252_s27, %s1443_s13, %s1960_s15, %s1960_s15, %s1961_s25  }
 0x228 PF: > { %s1472_s26 = sand.u32 1, %s1939_s9   ;;  %p2320_p11 = scmp.ne.s32.totalorder %s2309_s16, 0 }
 0x229   : > { %p2321_p9 = scmp.ge.s32.totalorder %s1951_s12, 2  ;;  %s1473_s8 = scalar_lea.sflag [#allocation4], %s1472_s26 }
 0x22b   : > { %p1783_p10 = pnand %p2321_p9, %p2320_p11 }
 0x22d   : > { %p1784_p12 = pneg %p1783_p10 }
 0x22f   : > { %1934 = dma.done.wait (%p1784_p12), %s1473_s8, 2048  }
 0x230   : > { %1936 = vsyncadd (%p1784_p12), %s1473_s8, 4294965248  ;;  %p16_p13 = scmp.ge.s32.totalorder %s2031_s21, 4   ;;  %s2322_s9 = smov %s1943_s10 }
 0x231   : > { %s2323_s10 = smov %s1947_s11  ;;  %s2324_s11 = smov %s2051_s29 }
 0x232   : > { %s2325_s12 = smov %s2031_s21  ;;  %18 = sbr.rel (!%p16_p13) target bundleno = 6 (0x6), region = 81 }
 0x237   :  { %1478 = vsyncpa [#allocation3], 1 }
 0x238   :  { %1480 = vsyncpa [#allocation3 + $0x1], 1 }
 0x239   :  { %1481 = vsyncpa [#allocation6], 1 }
 0x23a   :  { %1483 = vsyncpa [#allocation6 + $0x1], 1 }
 0x23b   :  { %1484 = vsyncpa [#allocation4], 1 }
 0x23c   :  { %1486 = vsyncpa [#allocation4 + $0x1], 1 }

</bundles_post_ra>
